<compile_context>
chip_gen: v6e
topology: v6e:2x2x1
jax: 0.10.0
libtpu: 0.0.40
codegen_flags: <defaults>
</compile_context>

<pallas_src>
import math
import functools

import numpy as np
import jax
import jax.numpy as jnp
from jax.experimental import pallas as pl
from jax.experimental.pallas import tpu as pltpu


# SURFACE_SIZE is an undefined module-level constant in the original source;
# pick a deterministic value here.
SURFACE_SIZE = 100.0
SIGHT_ANGLE = 30.0


def _normalize(v):
    return v / np.linalg.norm(v)


def make_constants(sight_angle=SIGHT_ANGLE, surface_size=SURFACE_SIZE):
    """Mirror of ReconstructionLoss.__init__ (deterministic, no checkpoints)."""
    perspective = _normalize(
        np.array([1.0, 1.0, -math.tan(sight_angle / 180.0 * math.pi)]))
    px = _normalize(np.cross(perspective, np.array([0.0, 0.0, 1.0])))
    py = _normalize(np.cross(px, perspective))
    xl = np.inner(np.array([0.0, surface_size, 0.0]), px)
    xr = np.inner(np.array([surface_size, 0.0, 0.0]), px)
    yl = np.inner(np.array([0.0, 0.0, 0.0]), py)
    yr = np.inner(np.array([surface_size, surface_size, 0.0]), py)
    gx = 0.5 / surface_size * (xr - xl) + xl
    gy = 0.5 / surface_size * (yr - yl) + yl
    base = px * gx + py * gy
    stride = surface_size / (20 - 1)
    return dict(
        p0=float(perspective[0]),
        cx=float(px[0] * (xr - xl)),
        cy=float(py[0] * (yr - yl)),
        base0=float(base[0]),
        stride=float(stride),
    )


def _folded_constants(sight_angle):
    """Fold affine rescales and pi/stride into 4 scalars + stride^2.

    theta = w * x_map with x_map = p0*((d*0.5+0.5)*500) + cx*(t1*0.5+0.5)
                                   + cy*(t2*0.5+0.5) + base0
          = a_d*d + a_t1*t1 + a_t2*t2 + a_k
    """
    c = make_constants(sight_angle)
    w = math.pi / c["stride"]
    return dict(
        a_d=250.0 * c["p0"] * w,
        a_t1=0.5 * c["cx"] * w,
        a_t2=0.5 * c["cy"] * w,
        a_k=(250.0 * c["p0"] + 0.5 * c["cx"] + 0.5 * c["cy"] + c["base0"]) * w,
        s2=c["stride"] * c["stride"],
    )


def _cdiv(a, b):
    return -(-a // b)


def _choose_tile_rows(rpc, max_rows=2048, min_tiles=1):
    """Pick the row-tile (lane-dense rows of 128) for one grid step.

    Preference order:
      1. whole plane, when it fits and no megacore split is needed,
      2. the largest multiple-of-8 exact divisor of rpc <= max_rows that is not
         absurdly small (no padding, no masked edge tiles),
      3. the fewest balanced tiles <= max_rows, rounded up to a sublane multiple;
         the wrapper pads rows and the kernel masks them (tile never exceeds
         max_rows -> bounded VMEM on v7x).
    """
    max_rows = max(8, max_rows - max_rows % 8)
    if rpc <= max_rows and (min_tiles <= 1 or rpc < 16):
        return rpc  # full plane per step (always a legal block)
    if rpc % 8 == 0:
        floor = min(max_rows, rpc) // 8  # stay within 8x of the ideal tile
        for d in range(min(max_rows, rpc), 7, -8):
            if d < floor:
                break
            if rpc % d == 0 and rpc // d >= min_tiles:
                return d
    ntiles = max(_cdiv(rpc, max_rows), min_tiles)
    return min(max_rows, _cdiv(_cdiv(rpc, ntiles), 8) * 8)


def _loss_kernel(d_ref, t0_ref, t1_ref, t2_ref, o_ref, *,
                 a_d, a_t1, a_t2, a_k, s2, valid_rows):
    """One grid step: (tile_rows, 128) lane-dense maps -> one (8,128) partial-sum tile."""
    d = d_ref[0].astype(jnp.float32)    # rot90(input[:, 0])        (rotated in glue / fused DMA)
    t0 = t0_ref[0].astype(jnp.float32)  # rot90^{-1}(target[:, 0])  (rotated in glue / fused DMA)
    t1 = t1_ref[0].astype(jnp.float32)  # target[:, 1] (channel-selecting BlockSpec)
    t2 = t2_ref[0].astype(jnp.float32)  # target[:, 2] (channel-selecting BlockSpec)

    # theta = (pi/stride) * x_map, constants pre-folded.
    theta = a_d * d + a_t1 * t1 + a_t2 * t2 + a_k

    # plot_contour: 1 - exp(-stride^2 * (1 - cos^2)) == 1 - exp(-stride^2 * sin^2)
    s = jnp.sin(theta)
    e = jnp.exp(-s2 * (s * s))

    # |contour - (0.5*t0 + 0.5)| == |0.5 - e - 0.5*t0|  (GT affine folded into the abs)
    absdiff = jnp.abs(0.5 - e - 0.5 * t0)

    tr = absdiff.shape[0]
    if valid_rows is not None:
        # Padded plane: exactly zero the contribution of out-of-range rows.
        row = pl.program_id(1) * tr + jax.lax.broadcasted_iota(jnp.int32, (tr, 128), 0)
        absdiff = jnp.where(row < valid_rows, absdiff, 0.0)

    if tr % 8 == 0:
        part = absdiff.reshape(tr // 8, 8, 128).sum(axis=0)
    else:
        # Tiny whole-plane tile (shorter than one vreg): spread sum/8 over the
        # 8 output sublanes so the wrapper-side total stays exact.
        rowsum = jnp.sum(absdiff, axis=0, keepdims=True) * 0.125
        part = jnp.broadcast_to(rowsum, (8, 128))
    o_ref[0, 0] = part


def reconstruction_loss(inp, target, *, sight_angle=SIGHT_ANGLE, max_tile_rows=2048):
    consts = _folded_constants(sight_angle)
    B, _, H, W = inp.shape
    Bt, C, Ht, Wt = target.shape
    assert H == W, "module semantics (rot90 then elementwise add) require square spatial dims"
    assert (Bt, Ht, Wt) == (B, H, W) and C >= 3
    assert (H * W) % 128 == 0, "H*W must be a multiple of 128 for lane-dense tiling"
    # TODO(synk): widen coverage to H*W % 128 != 0 via spatial padding + masking.

    rpc = (H * W) // 128                 # lane-dense rows per (batch, channel) plane
    min_tiles = 2 if B < 2 else 1        # keep both v7x TensorCores busy when B == 1
    tr = _choose_tile_rows(rpc, max_tile_rows, min_tiles)
    nt = _cdiv(rpc, tr)
    rpc_pad = nt * tr
    needs_pad = rpc_pad != rpc

    # The two genuine data permutations. allow_input_fusion lets XLA fuse these
    # producers into the pallas_call's input DMAs instead of writing rotated copies
    # back to HBM. The reshapes below are contiguous dim merges (no extra copies).
    d_flat = jnp.rot90(inp[:, 0, :, :], k=1, axes=(1, 2)).reshape(B, rpc, 128)
    t0_flat = jnp.rot90(target[:, 0, :, :], k=-1, axes=(1, 2)).reshape(B, rpc, 128)

    plane_spec = pl.BlockSpec((1, tr, 128), lambda b, r: (b, r, 0))
    if needs_pad:
        # Rare-shape path: pad rows to a multiple of the (bounded) tile and mask
        # the pad rows in-kernel. Channels 1/2 must then be padded per-plane too.
        pad = ((0, 0), (0, rpc_pad - rpc), (0, 0))
        d_flat = jnp.pad(d_flat, pad)
        t0_flat = jnp.pad(t0_flat, pad)
        t1_flat = jnp.pad(target[:, 1, :, :].reshape(B, rpc, 128), pad)
        t2_flat = jnp.pad(target[:, 2, :, :].reshape(B, rpc, 128), pad)
        operands = (d_flat, t0_flat, t1_flat, t2_flat)
        in_specs = [plane_spec, plane_spec, plane_spec, plane_spec]
        allow_fusion = [True, True, True, True]
        valid_rows = rpc
    else:
        # Fast path: channels 1/2 picked straight out of contiguous NCHW target by
        # the BlockSpec index map -- no wrapper slice copies.
        tgt_flat = target.reshape(B * C, rpc, 128)
        t1_spec = pl.BlockSpec((1, tr, 128), lambda b, r: (C * b + 1, r, 0))
        t2_spec = pl.BlockSpec((1, tr, 128), lambda b, r: (C * b + 2, r, 0))
        operands = (d_flat, t0_flat, tgt_flat, tgt_flat)
        in_specs = [plane_spec, plane_spec, t1_spec, t2_spec]
        allow_fusion = [True, True, False, False]
        valid_rows = None

    kernel = functools.partial(_loss_kernel, **consts, valid_rows=valid_rows)

    # 4 inputs x double buffer. At the default max_tile_rows=2048 this is 8 MiB
    # (inside every chip's default scoped VMEM); only raise the cap if pushed past it.
    in_buf_bytes = 4 * 2 * tr * 128 * 4
    compiler_kwargs = dict(dimension_semantics=("parallel", "parallel"),
                           allow_input_fusion=allow_fusion)
    if in_buf_bytes > (12 << 20):
        compiler_kwargs["vmem_limit_bytes"] = int(
            max(32 << 20, min(2 * in_buf_bytes, 56 << 20)))

    elems = B * H * W
    cost = pl.CostEstimate(
        flops=30 * elems,
        transcendentals=2 * elems,                         # sin + exp per element
        bytes_accessed=4 * 4 * elems + 4 * B * nt * 8 * 128)

    partial_sums = pl.pallas_call(
        kernel,
        out_shape=jax.ShapeDtypeStruct((B, nt, 8, 128), jnp.float32),
        grid_spec=pltpu.PrefetchScalarGridSpec(
            num_scalar_prefetch=0,
            grid=(B, nt),
            in_specs=in_specs,
            out_specs=pl.BlockSpec((1, 1, 8, 128), lambda b, r: (b, r, 0, 0)),
        ),
        compiler_params=pltpu.CompilerParams(**compiler_kwargs),
        cost_estimate=cost,
    )(*operands)

    return jnp.sum(partial_sums) / (B * H * W)


def reconstruction_loss_ref(inp, target, *, sight_angle=SIGHT_ANGLE):
    """Pure-JAX mirror of the literal PyTorch forward (for correctness check)."""
    c = make_constants(sight_angle)
    inp = (inp * 0.5 + 0.5) * 500.0
    target = target * 0.5 + 0.5
    depth_map = jnp.rot90(inp, k=1, axes=(2, 3))
    x_map = (c["p0"] * depth_map[:, 0, :, :]
             + c["cx"] * target[:, 1, :, :]
             + c["cy"] * target[:, 2, :, :]
             + c["base0"])
    recon = jnp.rot90(x_map, k=1, axes=(1, 2))
    s = c["stride"]
    contour = 1.0 - jnp.exp(-(s ** 2) * (1.0 - jnp.cos(recon * (np.pi / s)) ** 2))
    contour_gt = target[:, 0, :, :]
    return jnp.mean(jnp.abs(contour - contour_gt))


if __name__ == "__main__":
    key = jax.random.PRNGKey(0)
    # (batch, spatial) configs: tiny whole-plane tile, multiple-of-8 tile, and a
    # B == 1 case that splits the plane so both v7x TensorCores get work.
    for B, HW in [(2, 16), (2, 64), (1, 64)]:
        key, k1, k2 = jax.random.split(key, 3)
        inp = jax.random.uniform(k1, (B, 1, HW, HW), jnp.float32, minval=-1.0, maxval=1.0)
        target = jax.random.uniform(k2, (B, 3, HW, HW), jnp.float32, minval=-1.0, maxval=1.0)

        loss = jax.block_until_ready(reconstruction_loss(inp, target))
        loss_ref = jax.block_until_ready(reconstruction_loss_ref(inp, target))
        np.testing.assert_allclose(np.asarray(loss), np.asarray(loss_ref),
                                   rtol=2e-3, atol=2e-3)
    print("KERNEL_OK")
</pallas_src>

<mosaic_0001>
module attributes {stable_mosaic.version = 11 : i64} {
  func.func @_loss_kernel(%arg0: i32, %arg1: i32, %arg2: memref<1x2x128xf32, #tpu.memory_space<vmem>>, %arg3: memref<1x2x128xf32, #tpu.memory_space<vmem>>, %arg4: memref<1x2x128xf32, #tpu.memory_space<vmem>>, %arg5: memref<1x2x128xf32, #tpu.memory_space<vmem>>, %arg6: memref<1x1x8x128xf32, #tpu.memory_space<vmem>>) attributes {dimension_semantics = [#tpu.dimension_semantics<parallel>, #tpu.dimension_semantics<parallel>], iteration_bounds = array<i64: 2, 1>, scalar_prefetch = 0 : i64, scratch_operands = 0 : i64, tpu.core_type = #tpu.core_type<tc>, window_params = [{transform_indices = @transform_0, window_bounds = array<i64: 1, 2, 128>}, {transform_indices = @transform_1, window_bounds = array<i64: 1, 2, 128>}, {transform_indices = @transform_2, window_bounds = array<i64: 1, 2, 128>}, {transform_indices = @transform_3, window_bounds = array<i64: 1, 2, 128>}, {transform_indices = @transform_4, window_bounds = array<i64: 1, 1, 8, 128>}]} {
    %c0 = arith.constant 0 : index
    %c0_0 = arith.constant 0 : index
    %c0_1 = arith.constant 0 : index
    %0 = vector.load %arg2[%c0, %c0_0, %c0_1] : memref<1x2x128xf32, #tpu.memory_space<vmem>>, vector<1x2x128xf32>
    %1 = vector.shape_cast %0 : vector<1x2x128xf32> to vector<2x128xf32>
    %c0_2 = arith.constant 0 : index
    %c0_3 = arith.constant 0 : index
    %c0_4 = arith.constant 0 : index
    %2 = vector.load %arg3[%c0_2, %c0_3, %c0_4] : memref<1x2x128xf32, #tpu.memory_space<vmem>>, vector<1x2x128xf32>
    %3 = vector.shape_cast %2 : vector<1x2x128xf32> to vector<2x128xf32>
    %c0_5 = arith.constant 0 : index
    %c0_6 = arith.constant 0 : index
    %c0_7 = arith.constant 0 : index
    %4 = vector.load %arg4[%c0_5, %c0_6, %c0_7] : memref<1x2x128xf32, #tpu.memory_space<vmem>>, vector<1x2x128xf32>
    %5 = vector.shape_cast %4 : vector<1x2x128xf32> to vector<2x128xf32>
    %c0_8 = arith.constant 0 : index
    %c0_9 = arith.constant 0 : index
    %c0_10 = arith.constant 0 : index
    %6 = vector.load %arg5[%c0_8, %c0_9, %c0_10] : memref<1x2x128xf32, #tpu.memory_space<vmem>>, vector<1x2x128xf32>
    %7 = vector.shape_cast %6 : vector<1x2x128xf32> to vector<2x128xf32>
    %cst = arith.constant 97.6911239 : f32
    %8 = vector.broadcast %cst : f32 to vector<2x128xf32>
    %9 = arith.mulf %8, %1 : vector<2x128xf32>
    %cst_11 = arith.constant 29.8451309 : f32
    %10 = vector.broadcast %cst_11 : f32 to vector<2x128xf32>
    %11 = arith.mulf %10, %5 : vector<2x128xf32>
    %12 = arith.addf %9, %11 : vector<2x128xf32>
    %cst_12 = arith.constant 4.263590e+00 : f32
    %13 = vector.broadcast %cst_12 : f32 to vector<2x128xf32>
    %14 = arith.mulf %13, %7 : vector<2x128xf32>
    %15 = arith.addf %12, %14 : vector<2x128xf32>
    %cst_13 = arith.constant 102.295799 : f32
    %16 = vector.broadcast %cst_13 : f32 to vector<2x128xf32>
    %17 = arith.addf %15, %16 : vector<2x128xf32>
    %18 = math.sin %17 : vector<2x128xf32>
    %19 = arith.mulf %18, %18 : vector<2x128xf32>
    %cst_14 = arith.constant -27.7008305 : f32
    %20 = vector.broadcast %cst_14 : f32 to vector<2x128xf32>
    %21 = arith.mulf %20, %19 : vector<2x128xf32>
    %22 = math.exp %21 : vector<2x128xf32>
    %cst_15 = arith.constant 5.000000e-01 : f32
    %23 = vector.broadcast %cst_15 : f32 to vector<2x128xf32>
    %24 = arith.subf %23, %22 : vector<2x128xf32>
    %cst_16 = arith.constant 5.000000e-01 : f32
    %25 = vector.broadcast %cst_16 : f32 to vector<2x128xf32>
    %26 = arith.mulf %25, %3 : vector<2x128xf32>
    %27 = arith.subf %24, %26 : vector<2x128xf32>
    %28 = math.absf %27 : vector<2x128xf32>
    %cst_17 = arith.constant dense<0.000000e+00> : vector<128xf32>
    %29 = vector.multi_reduction <add>, %28, %cst_17 [0] : vector<2x128xf32> to vector<128xf32>
    %30 = vector.shape_cast %29 : vector<128xf32> to vector<1x128xf32>
    %cst_18 = arith.constant 1.250000e-01 : f32
    %31 = vector.broadcast %cst_18 : f32 to vector<1x128xf32>
    %32 = arith.mulf %30, %31 : vector<1x128xf32>
    %33 = vector.shape_cast %32 : vector<1x128xf32> to vector<1x128xf32>
    %34 = vector.broadcast %33 : vector<1x128xf32> to vector<8x128xf32>
    %c0_19 = arith.constant 0 : index
    %c0_20 = arith.constant 0 : index
    %c0_21 = arith.constant 0 : index
    %c0_22 = arith.constant 0 : index
    %35 = vector.load %arg6[%c0_19, %c0_20, %c0_21, %c0_22] : memref<1x1x8x128xf32, #tpu.memory_space<vmem>>, vector<1x1x8x128xf32>
    %36 = vector.shape_cast %35 : vector<1x1x8x128xf32> to vector<8x128xf32>
    %37 = vector.shape_cast %34 : vector<8x128xf32> to vector<1x1x8x128xf32>
    tpu.vector_store %arg6[%c0_19, %c0_20, %c0_21, %c0_22], %37 {strides = array<i32>} : memref<1x1x8x128xf32, #tpu.memory_space<vmem>>, vector<1x1x8x128xf32>,
    return
  }
  func.func @transform_0(%arg0: i32, %arg1: i32) -> (i32, i32, i32) {
    %c0_i32 = arith.constant 0 : i32
    %c0_i32_0 = arith.constant 0 : i32
    return %arg0, %arg1, %c0_i32 : i32, i32, i32
  }
  func.func @transform_1(%arg0: i32, %arg1: i32) -> (i32, i32, i32) {
    %c0_i32 = arith.constant 0 : i32
    %c0_i32_0 = arith.constant 0 : i32
    return %arg0, %arg1, %c0_i32 : i32, i32, i32
  }
  func.func @transform_2(%arg0: i32, %arg1: i32) -> (i32, i32, i32) {
    %c3_i32 = arith.constant 3 : i32
    %0 = arith.muli %c3_i32, %arg0 : i32
    %c1_i32 = arith.constant 1 : i32
    %1 = arith.addi %0, %c1_i32 : i32
    %c0_i32 = arith.constant 0 : i32
    %c0_i32_0 = arith.constant 0 : i32
    return %1, %arg1, %c0_i32 : i32, i32, i32
  }
  func.func @transform_3(%arg0: i32, %arg1: i32) -> (i32, i32, i32) {
    %c3_i32 = arith.constant 3 : i32
    %0 = arith.muli %c3_i32, %arg0 : i32
    %c2_i32 = arith.constant 2 : i32
    %1 = arith.addi %0, %c2_i32 : i32
    %c0_i32 = arith.constant 0 : i32
    %c0_i32_0 = arith.constant 0 : i32
    return %1, %arg1, %c0_i32 : i32, i32, i32
  }
  func.func @transform_4(%arg0: i32, %arg1: i32) -> (i32, i32, i32, i32) {
    %c0_i32 = arith.constant 0 : i32
    %c0_i32_0 = arith.constant 0 : i32
    %c0_i32_1 = arith.constant 0 : i32
    return %arg0, %arg1, %c0_i32, %c0_i32_0 : i32, i32, i32, i32
  }
}

</mosaic_0001>

<bundles_post_ra>
// kernel: tpu_custom_call.1
= control target key start
LH: loop header
LB: loop body
LE: loop exit
PB: predicated region body
PF: predicated region fallthrough
CT: control target
= control target key end

     0   :  { %s1474_s0 = inlined_call_operand.hbm [shape: f32[2,2,128], index: 0, kind: input, shape index: {}]   ;;  %s1475_s1 = inlined_call_operand.hbm [shape: f32[2,2,128], index: 1, kind: input, shape index: {}]   ;;  %s1476_s2 = inlined_call_operand.hbm [shape: f32[6,2,128], index: 2, kind: input, shape index: {}]   ;;  %s1477_s3 = inlined_call_operand.hbm [shape: f32[6,2,128], index: 3, kind: input, shape index: {}]   ;;  %s1478_s4 = inlined_call_operand.hbm [shape: f32[2,1,8,128], index: 4, kind: output, shape index: {}]  }
   0x1   :  { %1493 = sst [smem:[#allocation23_spill]] %s1475_s1 }
   0x2   :  { %1494 = sst [smem:[#allocation24_spill]] %s1478_s4 }
   0x3   :  { %9 = vsyncpa [#allocation3], 0 }
   0x4   :  { %11 = vsyncpa [#allocation3 + $0x1], 0 }
   0x5   :  { %12 = vsyncpa [#allocation6], 0 }
   0x6   :  { %14 = vsyncpa [#allocation6 + $0x1], 0 }
   0x7   :  { %15 = vsyncpa [#allocation9], 0 }
   0x8   :  { %17 = vsyncpa [#allocation9 + $0x1], 0 }
   0x9   :  { %18 = vsyncpa [#allocation4], 0 }
   0xa   :  { %20 = vsyncpa [#allocation4 + $0x1], 0  ;;  %s1122_s15 = smov 0   ;;  %s1124_s16 = smov 0  }
   0xb   :  { %s1126_s17 = smov 0   ;;  %s1128_s18 = smov 0  }
   0xc   :  { %s1130_s19 = smov 0   ;;  %s1132_s20 = smov 0  }
   0xd   :  { %s1134_s21 = smov 0   ;;  %s1136_s22 = smov 0  }
   0xe   :  { %s1138_s23 = smov 0   ;;  %s1140_s24 = smov 0  }
   0xf   :  { %s1142_s25 = smov 0   ;;  %s1144_s26 = smov 0  }
  0x10 LB: > { %1495 = sst [smem:[#allocation16_spill]] %s1064_s21  ;;  %s1183_s27 = sadd.s32 4294967295, %s1084_s26   ;;  %s1084_s26 = sphi %s1144_s26, %s26_s26   ;;  %s1080_s25 = sphi %s1142_s25, %s1544_s25   ;;  %s1076_s24 = sphi %s1140_s24, %s1543_s24   ;;  %s1072_s23 = sphi %s1138_s23, %s1542_s23   ;;  %s1068_s22 = sphi %s1136_s22, %s1541_s22   ;;  %s1064_s21 = sphi %s1134_s21, %s1533_s21   ;;  %s1060_s20 = sphi %s1132_s20, %s1540_s20   ;;  %s1056_s19 = sphi %s1130_s19, %s1539_s19   ;;  %s1052_s18 = sphi %s1128_s18, %s1538_s18   ;;  %s1048_s17 = sphi %s1126_s17, %s1537_s17   ;;  %s1044_s16 = sphi %s1124_s16, %s1536_s16   ;;  %s1040_s15 = sphi %s1122_s15, %s1535_s15  }
  0x11   : > { %1496 = sst [smem:[#allocation17_spill]] %s1068_s22  ;;  %s664_s28 = sadd.s32 4294967294, %s1084_s26  }
  0x12   : > { %1497 = sst [smem:[#allocation18_spill]] %s1076_s24  ;;  %s38_s29 = sadd.s32 1, %s1080_s25 }
  0x13   : > { %s47_s30 = sadd.s32 1, %s1072_s23  ;;  %p40_p0 = scmp.ge.s32.totalorder %s38_s29, 2 }
  0x14   : > { %p54_p1 = scmp.ne.s32.totalorder %s1072_s23, %s1068_s22  ;;  %p1490_p2 = scmp.eq.s32.totalorder %s1084_s26, 0 }
  0x15   : > { %p60_p3 = scmp.ne.s32.totalorder %s1068_s22, %s1064_s21  ;;  %s1546_s29 = smov (%p40_p0, %s38_s29), 0 }
  0x16   : > { %p1200_p4 = por %p1490_p2, %p54_p1  ;;  %p1489_p5 = scmp.eq.s32.totalorder %s1183_s27, 0 }
  0x17   : > { %s42_s6 = ssub.s32 %s1080_s25, %s1546_s29  ;;  %s1479_s7 = smul.u32 3, %s1080_s25 }
  0x18   : > { %p45_p6 = scmp.eq.s32.totalorder %s42_s6, 0  ;;  %p1213_p7 = por %p1489_p5, %p60_p3 }
  0x19   : > { %s1219_s9 = sadd.s32 1, %s1479_s7  ;;  %p178_p8 = scmp.eq.s32.totalorder %s1183_s27, 1 }
  0x1a   : > { %s1499_s8 = scalar_select %p1213_p7, 1, 0 }
  0x1b   : > { %s1223_s11 = scalar_select %p45_p6, %s1072_s23, %s47_s30  }
  0x1c   : > { %1500 = sst [smem:[#allocation19_spill]] %s1499_s8  ;;  %p184_p9 = scmp.eq.s32.totalorder %s664_s28, 1 }
  0x1d   : > { %1501 = sst [smem:[#allocation20_spill]] %s1223_s11  ;;  %p1488_p11 = scmp.lt.s32.totalorder %s1084_s26, 2 }
  0x1e   : > { %p1231_p12 = por %p178_p8, %p54_p1  ;;  %p1238_p13 = por %p184_p9, %p60_p3 }
  0x1f   : > { %s1485_s14 = sand.u32 1, %s1072_s23   ;;  %s668_s6 = sshll.u32 %s1080_s25, 5 }
  0x20   : > { %s1502_s12 = scalar_select %p1231_p12, 1, 0 }
  0x21   : > { %s1504_s13 = scalar_select %p1238_p13, 1, 0 }
  0x22   : > { %1503 = sst [smem:[#allocation21_spill]] %s1502_s12  ;;  %s667_s30 = sshll.u32 %s1485_s14, 1 }
  0x23   : > { %1505 = sst [smem:[#allocation22_spill]] %s1504_s13  ;;  %p1250_p0 = pnand %p1488_p11, %p1200_p4 }
  0x24   : > { %s223_s7 = sand.u32 1, %s1084_s26   ;;  %s1507_s1 = sld [smem:[#allocation23_spill]] }
  0x25   : > { %s227_s4 = scalar_lea.vmem [#allocation5], %s667_s30  ;;  %p675_p1 = scmp.ge.s32.totalorder %s1084_s26, 1 }
  0x26   : > { %s235_s12 = sshll.u32 %s227_s4, 4  ;;  %s1259_s13 = scalar_lea.sflag [#allocation6], %s223_s7  ;;  %s236_s12 = int_to_ptr.vmem [resolvable:$true] %s235_s12 }
  0x27   : > { %p832_p3 = pneg %p1250_p0  ;;  %s843_s5 = scalar_lea.vmem %s236_s12, 32 }
  0x28   : > { %p844_p4 = scmp.ne.s32.totalorder %s236_s12, %s843_s5  ;;  %s1086_s14 = smov [#allocation5]  }
  0x29   : > { %s848_s24 = sshll.u32 %s1086_s14, 4  ;;  %s849_s24 = int_to_ptr.vmem [resolvable:$false] %s848_s24 }
  0x2a   : > { %s233_s21 = scalar_lea.hbm %s1507_s1, %s668_s6  ;;  %p846_p6 = pnand %p844_p4, %p832_p3 }
  0x2b   : > { %s850_s8 = scalar_lea.vmem %s849_s24, 64  ;;  %p851_p9 = scmp.lt.s32.totalorder %s236_s12, %s849_s24 }
  0x2c   : > { %p847_p8 = pneg %p846_p6  ;;  %p852_p10 = scmp.lt.s32.totalorder %s850_s8, %s843_s5 }
  0x2e   : > { %p853_p11 = por %p852_p10, %p851_p9 }
  0x30   : > { %p854_p5 = pnand %p853_p11, %p847_p8 }
  0x32   : > { %857 = shalt.err (!%p854_p5)
}
  0x33   : > { %709 = dma.hbm_to_vmem [thread:$0]  (!%p1250_p0), %s233_s21, 32, %s236_s12, %s1259_s13  }
  0x34   : > { %p282_p2 = scmp.lt.s32.totalorder %s1084_s26, 3  ;;  %s214_s8 = scalar_lea.hbm %s1474_s0, %s668_s6 }
  0x35   : > { %s208_s10 = scalar_lea.vmem [#allocation2], %s667_s30  ;;  %s1509_s14 = sand.u32 1, %s1072_s23  }
  0x36   : > { %p1272_p4 = pnand %p675_p1, %p282_p2  ;;  %s216_s11 = sshll.u32 %s208_s10, 4  ;;  %s217_s11 = int_to_ptr.vmem [resolvable:$true] %s216_s11 }
  0x37   : > { %s205_s5 = scalar_lea.sflag [#allocation3], %s1509_s14  ;;  %s871_s1 = scalar_lea.vmem %s217_s11, 32 }
  0x38   : > { %p872_p5 = scmp.ne.s32.totalorder %s217_s11, %s871_s1  ;;  %s1087_s21 = smov [#allocation2]  }
  0x39   : > { %s876_s12 = sshll.u32 %s1087_s21, 4  ;;  %s877_s12 = int_to_ptr.vmem [resolvable:$false] %s876_s12 }
  0x3a   : > { %p874_p10 = pnand %p872_p5, %p832_p3  ;;  %s878_s22 = scalar_lea.vmem %s877_s12, 64 }
  0x3b   : > { %p879_p2 = scmp.lt.s32.totalorder %s217_s11, %s877_s12  ;;  %p880_p1 = scmp.lt.s32.totalorder %s878_s22, %s871_s1 }
  0x3c   : > { %p875_p11 = pneg %p874_p10 }
  0x3d   : > { %p881_p6 = por %p880_p1, %p879_p2 }
  0x3f   : > { %p882_p8 = pnand %p881_p6, %p875_p11 }
  0x41   : > { %885 = shalt.err (!%p882_p8)
}
  0x42   : > { %706 = dma.hbm_to_vmem [thread:$0]  (!%p1250_p0), %s214_s8, 32, %s217_s11, %s205_s5  }
  0x43   : > { %s1510_s1 = smul.u32 3, %s1546_s29  ;;  %s107_s30 = sadd.s32 1, %s1060_s20 }
  0x44   : > { %p114_p9 = scmp.ne.s32.totalorder %s1060_s20, %s1056_s19  ;;  %p120_p5 = scmp.ne.s32.totalorder %s1056_s19, %s1052_s18 }
  0x45   : > { %s101_s22 = sadd.s32 1, %s1510_s1  ;;  %s244_s28 = sand.u32 1, %s1060_s20  }
  0x46   : > { %s102_s6 = ssub.s32 %s1219_s9, %s101_s22  ;;  %p1511_p10 = scmp.eq.s32.totalorder %s1084_s26, 0 }
  0x47   : > { %p105_p3 = scmp.eq.s32.totalorder %s102_s6, 0  ;;  %p1512_p2 = scmp.eq.s32.totalorder %s1183_s27, 0 }
  0x48   : > { %p116_p11 = por %p114_p9, %p1511_p10  ;;  %s671_s10 = sshll.u32 %s244_s28, 1 }
  0x49   : > { %s1296_s7 = scalar_select %p105_p3, %s1060_s20, %s107_s30  }
  0x4a   : > { %p1302_p1 = por %p120_p5, %p1512_p2  ;;  %s672_s14 = smul.u32 96, %s1080_s25 }
  0x4b   : > { %p1514_p0 = scmp.lt.s32.totalorder %s1084_s26, 2  ;;  %s246_s5 = scalar_lea.vmem [#allocation7], %s671_s10 }
  0x4c   : > { %s558_s11 = scalar_lea.hbm %s1476_s2, %s672_s14  ;;  %s256_s21 = sshll.u32 %s246_s5, 4  ;;  %s257_s21 = int_to_ptr.vmem [resolvable:$true] %s256_s21 }
  0x4d   : > { %p1309_p6 = pnand %p1514_p0, %p116_p11  ;;  %s559_s12 = scalar_lea.hbm %s558_s11, 32 }
  0x4e   : > { %s899_s1 = scalar_lea.vmem %s257_s21, 32  ;;  %s1088_s22 = smov [#allocation7]  }
  0x4f   : > { %p888_p8 = pneg %p1309_p6  ;;  %p900_p3 = scmp.ne.s32.totalorder %s257_s21, %s899_s1 }
  0x50   : > { %s904_s6 = sshll.u32 %s1088_s22, 4  ;;  %s905_s6 = int_to_ptr.vmem [resolvable:$false] %s904_s6 }
  0x51   : > { %p902_p9 = pnand %p900_p3, %p888_p8  ;;  %s906_s30 = scalar_lea.vmem %s905_s6, 64 }
  0x52   : > { %p907_p10 = scmp.lt.s32.totalorder %s257_s21, %s905_s6  ;;  %p908_p11 = scmp.lt.s32.totalorder %s906_s30, %s899_s1 }
  0x53   : > { %p903_p5 = pneg %p902_p9 }
  0x54   : > { %p909_p2 = por %p908_p11, %p907_p10 }
  0x56   : > { %p910_p0 = pnand %p909_p2, %p903_p5 }
  0x58   : > { %913 = shalt.err (!%p910_p0)
}
  0x59   : > { %712 = dma.hbm_to_vmem [thread:$0]  (!%p1309_p6), %s559_s12, 32, %s257_s21, %s1259_s13  }
  0x5a   : > { %s1516_s28 = smul.u32 3, %s1080_s25  ;;  %s139_s8 = sadd.s32 1, %s1048_s17 }
  0x5b   : > { %s1517_s9 = smul.u32 3, %s1546_s29  ;;  %p146_p8 = scmp.ne.s32.totalorder %s1048_s17, %s1044_s16 }
  0x5c   : > { %s131_s10 = sadd.s32 2, %s1516_s28  ;;  %p152_p9 = scmp.ne.s32.totalorder %s1044_s16, %s1040_s15 }
  0x5d   : > { %s133_s18 = sadd.s32 2, %s1517_s9  ;;  %p1518_p5 = scmp.eq.s32.totalorder %s1084_s26, 0 }
  0x5e   : > { %s134_s11 = ssub.s32 %s131_s10, %s133_s18  ;;  %s263_s5 = sand.u32 1, %s1048_s17  }
  0x5f   : > { %p137_p3 = scmp.eq.s32.totalorder %s134_s11, 0  ;;  %p148_p10 = por %p146_p8, %p1518_p5 }
  0x60   : > { %p1519_p11 = scmp.eq.s32.totalorder %s1183_s27, 0  ;;  %s673_s13 = sshll.u32 %s263_s5, 1 }
  0x61   : > { %s1336_s1 = scalar_select %p137_p3, %s1048_s17, %s139_s8  }
  0x62   : > { %p1340_p2 = por %p152_p9, %p1519_p11  ;;  %s566_s6 = scalar_lea.hbm %s1477_s3, %s672_s14 }
  0x63   : > { %s567_s30 = scalar_lea.hbm %s566_s6, 64  ;;  %s267_s28 = scalar_lea.vmem [#allocation8], %s673_s13 }
  0x64   : > { %s277_s10 = sshll.u32 %s267_s28, 4  ;;  %p1521_p6 = scmp.lt.s32.totalorder %s1084_s26, 2  ;;  %s278_s10 = int_to_ptr.vmem [resolvable:$true] %s277_s10 }
  0x65   : > { %s264_s9 = scalar_lea.sflag [#allocation9], %s263_s5  ;;  %s928_s18 = scalar_lea.vmem %s278_s10, 32 }
  0x66   : > { %p1351_p0 = pnand %p1521_p6, %p148_p10  ;;  %p929_p3 = scmp.ne.s32.totalorder %s278_s10, %s928_s18 }
  0x67   : > { %s1089_s8 = smov [#allocation8]  }
  0x68   : > { %p917_p8 = pneg %p1351_p0  ;;  %s933_s11 = sshll.u32 %s1089_s8, 4  ;;  %s934_s11 = int_to_ptr.vmem [resolvable:$false] %s933_s11 }
  0x69   : > { %s935_s14 = scalar_lea.vmem %s934_s11, 64  ;;  %p936_p11 = scmp.lt.s32.totalorder %s278_s10, %s934_s11 }
  0x6a   : > { %p931_p9 = pnand %p929_p3, %p917_p8  ;;  %p937_p13 = scmp.lt.s32.totalorder %s935_s14, %s928_s18 }
  0x6c   : > { %p932_p5 = pneg %p931_p9  ;;  %p938_p12 = por %p937_p13, %p936_p11 }
  0x6e   : > { %p939_p10 = pnand %p938_p12, %p932_p5 }
  0x70   : > { %942 = shalt.err (!%p939_p10)
}
  0x71   : > { %715 = dma.hbm_to_vmem [thread:$0]  (!%p1351_p0), %s567_s30, 32, %s278_s10, %s264_s9  }
  0x72   : > { %286 = sbr.rel (%p1272_p4) target bundleno = 281 (0x119), region = 36  ;;  %s1523_s5 = sld [smem:[#allocation17_spill]] (!%p1272_p4) }
  0x78   : > { %s1362_s21 = sand.u32 1, %s1523_s5  }
  0x79   : > { %s676_s12 = sshll.u32 %s1362_s21, 1  ;;  %s289_s6 = scalar_lea.sflag [#allocation3], %s1362_s21 }
  0x7a   : > { %s292_s28 = scalar_lea.vmem [#allocation2], %s676_s12 }
  0x7b   : > { %1019 = dma.done.wait (%p1213_p7), %s289_s6, 32  }
  0x7c   : > { %1021 = vsyncadd (%p1213_p7), %s289_s6, 4294967264  ;;  %s297_s30 = sand.u32 1, %s1183_s27   ;;  %s1371_s4 = scalar_lea.vmem [#allocation5], %s676_s12 }
  0x7d   : > { %s298_s10 = scalar_lea.sflag [#allocation6], %s297_s30 }
  0x7e   : > { %1023 = dma.done.wait (%p1213_p7), %s298_s10, 32  }
  0x7f   : > { %1025 = vsyncadd (%p1213_p7), %s298_s10, 4294967264  ;;  %s308_s15 = sand.u32 1, %s1056_s19  }
  0x80   : > { %s678_s9 = sshll.u32 %s308_s15, 1 }
  0x81   : > { %s310_s18 = scalar_lea.vmem [#allocation7], %s678_s9 }
  0x82   : > { %1027 = dma.done.wait (%p1302_p1), %s298_s10, 32  }
  0x83   : > { %1029 = vsyncadd (%p1302_p1), %s298_s10, 4294967264  ;;  %s315_s27 = sand.u32 1, %s1044_s16  }
  0x84   : > { %s679_s8 = sshll.u32 %s315_s27, 1  ;;  %s316_s11 = scalar_lea.sflag [#allocation9], %s315_s27 }
  0x85   : > { %s319_s14 = scalar_lea.vmem [#allocation8], %s679_s8 }
  0x86   : > { %1031 = dma.done.wait (%p1340_p2), %s316_s11, 32  }
  0x87   : > { %1033 = vsyncadd (%p1340_p2), %s316_s11, 4294967264  ;;  %v363_v0 = vld [vmem:[%s292_s28] sm:$0x3]  ;;  %v365_v1 = vld [vmem:[%s310_s18] sm:$0x3]  ;;  %s1525_s24 = sld [smem:[#allocation18_spill]] }
  0x88   : > { %v366_v2 = vld [vmem:[%s319_s14] sm:$0x3]  ;;  %v367_v3 = vmul.f32 97.691124, %v363_v0  ;;  %v368_v4 = vmul.f32 29.84513, %v365_v1 }
  0x89   : > { %v370_v5 = vmul.f32 4.26359, %v366_v2  ;;  %v1090_v20 = vmov 683565275   ;;  %v1091_v22 = vmov 2475754826  }
  0x8a   : > { %v369_v6 = vadd.f32 %v368_v4, %v367_v3  ;;  %v1092_v24 = vmov 2131351028   ;;  %v1093_v26 = vmov 2102212464   ;;  %v1094_v28 = vmov 920167782  }
  0x8b   : > { %v1095_v35 = vmov 1326507024   ;;  %vm485_vm13 = vcmask 1041408   ;;  %s680_s22 = sshll.u32 %s1362_s21, 3  ;;  %s1526_s5 = sld [smem:[#allocation21_spill]] }
  0x8c   : > { %v371_v7 = vadd.f32 %v370_v5, %v369_v6  ;;  %s358_s13 = scalar_lea.vmem [#allocation10], %s680_s22  ;;  %s1527_s10 = sld [smem:[#allocation24_spill]] }
  0x8d   : > { %s510_s12 = sshll.u32 %s358_s13, 4  ;;  %s686_s6 = sshll.u32 %s1525_s24, 7  ;;  %s1411_s12 = int_to_ptr.vmem [resolvable:$true] %s510_s12 }
  0x8e   : > { %v1387_v8 = vadd.f32 102.2958, %v371_v7  ;;  %s496_s15 = scalar_lea.sflag [#allocation4], %s1362_s21  ;;  %s944_s9 = scalar_lea.vmem %s1411_s12, 128 }
  0x8f   : > { %p945_p7 = scmp.ne.s32.totalorder %s1411_s12, %s944_s9  ;;  %s1096_s18 = smov [#allocation10]  }
  0x90   : > { %v376_v9 = vand.u32 2139095040, %v1387_v8  ;;  %v373_v11 = vand.u32 2147483647, %v1387_v8  ;;  %vm375_vm7 = vcmp.lt.s32.totalorder %v1387_v8, 0  ;;  %vm465_vm12 = vweird.f32 %v1387_v8  ;;  %s948_s27 = sshll.u32 %s1096_s18, 4  ;;  %s949_s27 = int_to_ptr.vmem [resolvable:$false] %s948_s27 }
  0x91   : > { %p1528_p12 = scmp.ne.s32.totalorder %s1526_s5, 0  ;;  %s950_s8 = scalar_lea.vmem %s949_s27, 256 }
  0x92   : > { %v377_v10 = vshrl.u32 %v376_v9, 23  ;;  %v380_v14 = vand.u32 8388607, %v373_v11  ;;  %vm374_vm8 = vcmp.le.f32.partialorder %v373_v11, 0.7853982  ;;  %p951_p1 = scmp.lt.s32.totalorder %s1411_s12, %s949_s27  ;;  %p952_p2 = scmp.lt.s32.totalorder %s950_s8, %s944_s9 }
  0x93   : > { %p946_p13 = pnand %p945_p7, %p1528_p12 }
  0x94   : > { %v681_v12 = vadd.s32 4294967169, %v377_v10  ;;  %v381_v17 = vor.u32 8388608, %v380_v14  ;;  %p953_p6 = por %p952_p2, %p951_p1 }
  0x95   : > { %p947_p4 = pneg %p946_p13 }
  0x96   : > { %v383_v13 = vadd.s32 1, %v681_v12  ;;  %v421_v37 = vshll.u32 %v381_v17, 8 }
  0x97   : > { %p954_p0 = pnand %p953_p6, %p947_p4 }
  0x98   : > { %vm384_vm0 = vcmp.gt.s32.totalorder %v383_v13, 0 }
  0x99   : > { %v385_v15 = vsel %vm384_vm0, %v383_v13, 0 }
  0x9a   : > { %v387_v16 = vand.u32 31, %v385_v15  ;;  %v386_v18 = vshrl.u32 %v385_v15, 5 }
  0x9c   : > { %v388_v19 = vsub.s32 32, %v387_v16  ;;  %v390_v21 = vshll.u32 %v1090_v20, %v387_v16  ;;  %v393_v23 = vshll.u32 %v1091_v22, %v387_v16  ;;  %v396_v25 = vshll.u32 %v1092_v24, %v387_v16 }
  0x9d   : > { %v399_v27 = vshll.u32 %v1093_v26, %v387_v16  ;;  %v402_v29 = vshll.u32 %v1094_v28, %v387_v16  ;;  %vm405_vm1 = vcmp.lt.s32.totalorder %v386_v18, 1  ;;  %vm408_vm2 = vcmp.lt.s32.totalorder %v386_v18, 4 }
  0x9e   : > { %v389_v30 = vshrl.u32 %v1090_v20, %v388_v19  ;;  %v391_v31 = vshrl.u32 %v1091_v22, %v388_v19  ;;  %v394_v32 = vshrl.u32 %v1092_v24, %v388_v19  ;;  %v397_v33 = vshrl.u32 %v1093_v26, %v388_v19 }
  0x9f   : > { %v400_v34 = vshrl.u32 %v1094_v28, %v388_v19  ;;  %v403_v36 = vshrl.u32 %v1095_v35, %v388_v19  ;;  %vm406_vm3 = vcmp.lt.s32.totalorder %v386_v18, 2  ;;  %vm407_vm4 = vcmp.lt.s32.totalorder %v386_v18, 3 }
  0xa0   : > { %v392_v38 = vor.u32 %v391_v31, %v390_v21  ;;  %v395_v39 = vor.u32 %v394_v32, %v393_v23  ;;  %v398_v40 = vor.u32 %v397_v33, %v396_v25 }
  0xa1   : > { %v401_v41 = vor.u32 %v400_v34, %v399_v27  ;;  %v404_v42 = vor.u32 %v403_v36, %v402_v29 }
  0xa2   : > { %v409_v43 = vsel %vm405_vm1, %v389_v30, %v392_v38  ;;  %v410_v44 = vsel %vm408_vm2, %v398_v40, 2102212464  ;;  %v413_v45 = vsel %vm405_vm1, %v392_v38, %v395_v39  ;;  %v417_v46 = vsel %vm405_vm1, %v395_v39, %v398_v40 }
  0xa3   : > { %v411_v47 = vsel %vm407_vm4, %v395_v39, %v410_v44  ;;  %v414_v48 = vsel %vm408_vm2, %v401_v41, 920167782  ;;  %v418_v49 = vsel %vm408_vm2, %v404_v42, 1326507024 }
  0xa4   : > { %v415_v50 = vsel %vm407_vm4, %v398_v40, %v414_v48  ;;  %v419_v51 = vsel %vm407_vm4, %v401_v41, %v418_v49  ;;  %v412_v52 = vsel %vm406_vm3, %v409_v43, %v411_v47  ;;  %v364_v40 = vld [vmem:[%s1371_s4] sm:$0x3]  ;;  %s508_s4 = scalar_lea.hbm %s1527_s10, %s686_s6 }
  0xa5   : > { %v416_v53 = vsel %vm406_vm3, %v413_v45, %v415_v50  ;;  %v420_v54 = vsel %vm406_vm3, %v417_v46, %v419_v51  ;;  %v428_v59 = vmul.u32 %v421_v37, %v412_v52  ;;  %v482_v41 = vmul.f32 0.5, %v364_v40 }
  0xa6   : > { %v1393_v55 = vmul.u32.u64.low %v421_v37, %v420_v54  ;;  %v1394_v56 = vmul.u32.u64.high %v421_v37, %v420_v54, %v1393_v55  ;;  %v1396_v57 = vmul.u32.u64.low %v421_v37, %v416_v53  ;;  %v1397_v58 = vmul.u32.u64.high %v421_v37, %v416_v53, %v1396_v57 }
  0xa8   : > { %vm430_vm5 = vc.u32 %v1394_v56, %v1396_v57  ;;  %v431_v60 = vadd.s32 1, %v1397_v58  ;;  %v429_v7 = vadd.s32 %v1396_v57, %v1394_v56 }
  0xaa   : > { %v432_v61 = vsel %vm430_vm5, %v431_v60, %v1397_v58 }
  0xab   : > { %v433_v62 = vadd.s32 %v432_v61, %v428_v59 }
  0xad   : > { %v434_v63 = vadd.s32 536870912, %v433_v62 }
  0xaf   : > { %v435_v0 = vshrl.u32 %v434_v63, 30 }
  0xb1   : > { %v436_v1 = vshll.u32 %v435_v0, 30  ;;  %v459_v22 = vsub.s32 4, %v435_v0 }
  0xb3   : > { %v437_v2 = vsub.s32 %v433_v62, %v436_v1  ;;  %v460_v25 = vsel %vm375_vm7, %v459_v22, %v435_v0 }
  0xb4   : > { %v462_v27 = vsel %vm374_vm8, 0, %v460_v25 }
  0xb5   : > { %v439_v3 = vsub.s32 0, %v437_v2  ;;  %v466_v28 = vadd.s32 3, %v462_v27 }
  0xb7   : > { %v682_v4 = vmin.u32 %v439_v3, %v437_v2  ;;  %v467_v29 = vand.u32 3, %v466_v28 }
  0xb9   : > { %v441_v5 = vclz %v682_v4  ;;  %vm472_vm9 = vcmp.eq.s32.totalorder %v467_v29, 2  ;;  %vm469_vm10 = vcmp.eq.s32.totalorder %v467_v29, 0  ;;  %vm468_vm11 = vcmp.lt.s32.totalorder %v467_v29, 2 }
  0xbb   : > { %v683_v6 = vadd.s32 4294967294, %v441_v5 }
  0xbd   : > { %vm684_vm6 = vcmp.lt.s32.totalorder %v683_v6, 0 }
  0xbe   : > { %v444_v9 = vsel %vm684_vm6, 0, %v683_v6 }
  0xbf   : > { %v445_v10 = vsub.s32 32, %v444_v9  ;;  %v446_v12 = vshll.u32 %v437_v2, %v444_v9  ;;  %v449_v13 = vsub.s32 4294967266, %v444_v9 }
  0xc1   : > { %v447_v14 = vshrl.u32 %v429_v7, %v445_v10  ;;  %v450_v15 = vadd.s32 127, %v449_v13 }
  0xc3   : > { %v448_v16 = vor.u32 %v447_v14, %v446_v12  ;;  %v451_v17 = vshll.u32 %v450_v15, 23 }
  0xc5   : > { %v452_v18 = vor.u32 4788187, %v451_v17  ;;  %v455_v19 = vcvt.s32.f32 %v448_v16 }
  0xc7   : > { %v453_v20 = vand.u32 2147483647, %v452_v18 }
  0xc9   : > { %v456_v21 = vmul.f32 %v455_v19, %v453_v20 }
  0xcb   : > { %v457_v23 = vxor.u32 2147483648, %v456_v21 }
  0xcd   : > { %v458_v24 = vsel %vm375_vm7, %v457_v23, %v456_v21 }
  0xce   : > { %v461_v26 = vsel %vm374_vm8, %v1387_v8, %v458_v24 }
  0xcf   : > { %824 = vcosq.f32 %v461_v26 }
  0xd0   : > { %826 = vsinq.f32 %v461_v26 }
  0xdc   : > { %v825_v30 = vpop.eup %824 }
  0xdd   : > { %v827_v31 = vpop.eup %826  ;;  %v473_v32 = vxor.u32 2147483648, %v825_v30 }
  0xde   : > { %v470_v33 = vxor.u32 2147483648, %v827_v31 }
  0xdf   : > { %v474_v11 = vsel %vm472_vm9, %v473_v32, %v827_v31 }
  0xe0   : > { %v471_v34 = vsel %vm469_vm10, %v825_v30, %v470_v33 }
  0xe1   : > { %v475_v35 = vsel %vm468_vm11, %v471_v34, %v474_v11 }
  0xe2   : > { %v476_v36 = vsel %vm465_vm12, nan, %v475_v35 }
  0xe3   : > { %v477_v37 = vmul.f32 %v476_v36, %v476_v36 }
  0xe5   : > { %v478_v38 = vmul.f32 -27.70083, %v477_v37 }
  0xe7   : > { %v479_v39 = vmul.f32 1.442695, %v478_v38 }
  0xe9   : > { %828 = vpow2.f32 %v479_v39 }
  0xf6   : > { %v829_v42 = vpop.eup %828 }
  0xf7   : > { %v481_v43 = vsub.f32 0.5, %v829_v42 }
  0xf9   : > { %v483_v44 = vsub.f32 %v481_v43, %v482_v41 }
  0xfb   : > { %v484_v45 = vand.u32 2147483647, %v483_v44 }
  0xfd   : > { %v486_v46 = vsel %vm485_vm13, %v484_v45, 0.0 }
  0xfe   : > { %v487_v8 = vrot.slane %v486_v46, 4 }
 0x100   : > { %v488_v47 = vadd.f32 %v487_v8, %v486_v46 }
 0x102   : > { %v489_v48 = vrot.slane %v488_v47, 2 }
 0x104   : > { %v490_v49 = vadd.f32 %v489_v48, %v488_v47 }
 0x106   : > { %v491_v50 = vrot.slane %v490_v49, 1 }
 0x108   : > { %v492_v51 = vadd.f32 %v491_v50, %v490_v49 }
 0x10a   : > { %v493_v52 = vmul.f32 0.125, %v492_v51 }
 0x10c   : > { %494 = vst [vmem:[%s358_s13] sm:$0xff] %v493_v52 }
 0x10d   : > { %957 = shalt.err (!%p954_p0)
}
 0x10e   : > { %s958_s11 = scalar_lea.hbm %s508_s4, 128  ;;  %s962_s24 = scalar_lea.hbm %s1527_s10, 256 }
 0x10f   : > { %p959_p8 = scmp.ne.s32.totalorder %s508_s4, %s958_s11  ;;  %p963_p5 = scmp.lt.s32.totalorder %s508_s4, %s1527_s10 }
 0x110   : > { %p964_p11 = scmp.lt.s32.totalorder %s962_s24, %s958_s11 }
 0x111   : > { %p960_p3 = pnand %p959_p8, %p1528_p12 }
 0x112   : > { %p965_p10 = por %p964_p11, %p963_p5 }
 0x113   : > { %p961_p9 = pneg %p960_p3 }
 0x115   : > { %p966_p7 = pnand %p965_p10, %p961_p9 }
 0x117   : > { %969 = shalt.err (!%p966_p7)
}
 0x118   : > { %701 = dma.vmem_to_hbm [thread:$0]  (%p1528_p12), %s1411_s12, 128, %s508_s4, %s496_s15  }
 0x119 PF: > { %s1529_s6 = sld [smem:[#allocation16_spill]]  ;;  %p1532_p4 = scmp.ge.s32.totalorder %s1084_s26, 2 }
 0x11a   : > { %s1530_s28 = sld [smem:[#allocation22_spill]] }
 0x11f   : > { %s522_s30 = sand.u32 1, %s1529_s6  }
 0x120   : > { %p1531_p13 = scmp.ne.s32.totalorder %s1530_s28, 0  ;;  %s523_s9 = scalar_lea.sflag [#allocation4], %s522_s30 }
 0x122   : > { %p717_p1 = pnand %p1532_p4, %p1531_p13 }
 0x124   : > { %p718_p2 = pneg %p717_p1 }
 0x126   : > { %1035 = dma.done.wait (%p718_p2), %s523_s9, 128  }
 0x127   : > { %1037 = vsyncadd (%p718_p2), %s523_s9, 4294967168  ;;  %s26_s26 = sadd.s32 1, %s1084_s26   ;;  %s1533_s21 = sld [smem:[#allocation17_spill]] }
 0x128   : > { %p23_p6 = scmp.ge.s32.totalorder %s26_s26, 4   ;;  %s1534_s5 = sld [smem:[#allocation20_spill]] }
 0x129   : > { %s1535_s15 = smov %s1044_s16  ;;  %s1536_s16 = smov %s1048_s17 }
 0x12a   : > { %s1537_s17 = smov %s1336_s1  ;;  %s1538_s18 = smov %s1056_s19 }
 0x12b   : > { %s1539_s19 = smov %s1060_s20  ;;  %s1540_s20 = smov %s1296_s7 }
 0x12c   : > { %s1541_s22 = smov %s1072_s23  ;;  %s1543_s24 = smov %s1080_s25 }
 0x12d   : > { %s1544_s25 = smov %s1546_s29  ;;  %25 = sbr.rel (!%p23_p6) target bundleno = 16 (0x10), region = 118 }
 0x12e   : > { %s1542_s23 = smov %s1534_s5 }
 0x132   :  { %528 = vsyncpa [#allocation3], 1 }
 0x133   :  { %530 = vsyncpa [#allocation3 + $0x1], 1 }
 0x134   :  { %531 = vsyncpa [#allocation6], 1 }
 0x135   :  { %533 = vsyncpa [#allocation6 + $0x1], 1 }
 0x136   :  { %534 = vsyncpa [#allocation9], 1 }
 0x137   :  { %536 = vsyncpa [#allocation9 + $0x1], 1 }
 0x138   :  { %537 = vsyncpa [#allocation4], 1 }
 0x139   :  { %539 = vsyncpa [#allocation4 + $0x1], 1 }

</bundles_post_ra>
